<compile_context>
chip_gen: v5e
topology: v5e:2x2
jax: 0.10.0
libtpu: 0.0.40
codegen_flags: <defaults>
</compile_context>

<pallas_src>
import functools

import jax
import jax.numpy as jnp
from jax.experimental import pallas as pl
from jax.experimental.pallas import tpu as pltpu

EPS = 1e-7          # scglue EPS
LEAKY_SLOPE = 0.2   # LeakyReLU negative_slope
BN_EPS = 1e-5       # BatchNorm1d default eps
LANE = 128          # TPU lane width / minimum dense tile width


def _round_up(x, m):
    return ((x + m - 1) // m) * m


def _softplus(x):
    # Matches F.softplus(x) with default beta=1, threshold=20.  The exp input is
    # clamped so the non-selected branch never overflows to inf (NaN-safe if anyone
    # ever differentiates through this).
    return jnp.where(x > 20.0, x, jnp.log1p(jnp.exp(jnp.minimum(x, 20.0))))


def _composite_encoder_kernel(
    xrep_ref,          # (TILE_B, Fp)   f32   batch tile of xrep (zero-padded K)
    w0_ref, b0_ref,    # (Fp, MHp) bf16, (1, MHp) f32     modalities lane-packed
    w1_ref, b1_ref,    # (MHp, MHp) bf16, (1, MHp) f32    block-diag, BN0 folded in
    wh_ref, bh_ref,    # (MHp, Yp) bf16, (1, Yp) f32      fused [loc | std | pad], BN1 folded
    out_ref,           # (TILE_B, Yp)   f32   fused lane-dense output
    *, mo,             # static: n_modalities * out_features (loc/std split point)
):
    """3 MXU matmuls (bf16 operands, f32 accumulation) + f32 VPU/EUP elementwise."""
    # ---- hidden layer 0: Linear -> LeakyReLU  (BN0 folded into w1/b1, Dropout = identity) ----
    h = jnp.dot(xrep_ref[...].astype(jnp.bfloat16), w0_ref[...],
                preferred_element_type=jnp.float32) + b0_ref[...]
    h = jnp.where(h > 0, h, LEAKY_SLOPE * h)

    # ---- hidden layer 1: Linear -> LeakyReLU  (BN1 folded into heads, Dropout = identity) ----
    h = jnp.dot(h.astype(jnp.bfloat16), w1_ref[...],
                preferred_element_type=jnp.float32) + b1_ref[...]
    h = jnp.where(h > 0, h, LEAKY_SLOPE * h)

    # ---- fused heads: one matmul produces [loc | std_lin | pad] ----
    y = jnp.dot(h.astype(jnp.bfloat16), wh_ref[...],
                preferred_element_type=jnp.float32) + bh_ref[...]

    # Apply softplus only on the std lanes [mo, 2*mo) via a lane mask; one wide,
    # unmasked store of the full (TILE_B, Yp) tile.
    lane = jax.lax.broadcasted_iota(jnp.int32, y.shape, dimension=1)
    std_lanes = (lane >= mo) & (lane < 2 * mo)
    out_ref[...] = jnp.where(std_lanes, _softplus(y) + EPS, y).astype(out_ref.dtype)


def composite_data_encoder_forward(x, xrep, packed, lazy_normalizer=True):
    """CompositeDataEncoder.forward on the xrep (lazy-normalizer) branch.

    x      : (B, in_raw_features)  -- unused on this path (compute_l is lazy / abstract)
    xrep   : (B, in_features) float32
    packed : dict from pack_params() (BN folded, bf16 weights, lane-padded)
    Returns (loc, std, l) with loc/std of shape (B, n_modalities * out_features), l = None.
    """
    del x  # TODO(synk): compute_l / normalize are abstract in the torch module; only the
    #                    concrete lazy-normalizer xrep branch is implemented (l = None).
    B, F = xrep.shape
    Fp, MHp = packed["w0"].shape
    Yp = packed["wh"].shape[1]
    MO = packed["mo"]

    # Batch tiling: biggest tile up to 256 rows; pad B so the grid divides evenly.
    TILE_B = min(256, _round_up(B, 8))
    Bp = _round_up(B, TILE_B)
    if Bp != B or Fp != F:
        xrep = jnp.pad(xrep, ((0, Bp - B), (0, Fp - F)))

    grid = (Bp // TILE_B,)

    # Explicit scoped-VMEM sizing (resident weights + double-buffered I/O tiles +
    # f32 intermediates), clamped for v7x's 64 MiB physical VMEM.
    weight_bytes = (Fp * MHp + MHp * MHp + MHp * Yp) * 2 + (2 * MHp + Yp) * 4
    io_bytes = 2 * TILE_B * (Fp + Yp) * 4
    scratch_bytes = 4 * TILE_B * max(MHp, Yp) * 4
    vmem_limit = int(min(64 << 20,
                         max(4 << 20, 2 * weight_bytes + io_bytes + scratch_bytes + (1 << 20))))

    const = lambda i: (0, 0)  # weights: same block every grid step -> VMEM-resident
    out = pl.pallas_call(
        functools.partial(_composite_encoder_kernel, mo=MO),
        out_shape=jax.ShapeDtypeStruct((Bp, Yp), jnp.float32),
        grid=grid,
        in_specs=[
            pl.BlockSpec((TILE_B, Fp), lambda i: (i, 0)),   # xrep batch tiles stream
            pl.BlockSpec((Fp, MHp), const), pl.BlockSpec((1, MHp), const),
            pl.BlockSpec((MHp, MHp), const), pl.BlockSpec((1, MHp), const),
            pl.BlockSpec((MHp, Yp), const), pl.BlockSpec((1, Yp), const),
        ],
        out_specs=pl.BlockSpec((TILE_B, Yp), lambda i: (i, 0)),
        compiler_params=pltpu.CompilerParams(
            dimension_semantics=("parallel",),   # batch axis -> both TCs on v7x megacore
            vmem_limit_bytes=vmem_limit,
        ),
    )(xrep, packed["w0"], packed["b0"], packed["w1"], packed["b1"],
      packed["wh"], packed["bh"])

    loc = out[:B, :MO]
    std = out[:B, MO:2 * MO]
    # D.Normal(loc, std) is represented as the (loc, std) pair; l is None on this path.
    return loc, std, None


def pack_params(params):
    """Host-side prep: fold eval-mode BatchNorm into the following linear layer, pack all
    modalities along the feature (lane) axis, zero-pad every lane / contraction dim to a
    multiple of 128, and cast the matmul weights to bf16 (biases stay f32)."""
    M, F, H = params["w0"].shape
    O = params["wloc"].shape[-1]

    # BN(eval) after LeakyReLU feeds a Linear, so it folds exactly:
    #   (h*g + s) @ W + b == h @ (diag(g) @ W) + (s @ W + b)
    w1 = params["bn0_scale"][:, :, None] * params["w1"]                                  # (M,H,H)
    b1 = jnp.einsum("mh,mhk->mk", params["bn0_shift"], params["w1"]) + params["b1"]      # (M,H)
    wloc = params["bn1_scale"][:, :, None] * params["wloc"]                              # (M,H,O)
    bloc = jnp.einsum("mh,mho->mo", params["bn1_shift"], params["wloc"]) + params["bloc"]
    wstd = params["bn1_scale"][:, :, None] * params["wstd"]
    bstd = jnp.einsum("mh,mho->mo", params["bn1_shift"], params["wstd"]) + params["bstd"]

    # TODO(synk): for large per-modality H (>=128) or many modalities the block-diagonal
    # packing wastes MXU flops / HBM / VMEM ((M*H)^2 vs M*H^2); switch to per-modality
    # dense matmuls with a grid axis over M in that regime.
    block_diag = lambda ws: jax.scipy.linalg.block_diag(*[ws[m] for m in range(M)])

    Fp = _round_up(F, LANE)
    MHp = _round_up(M * H, LANE)
    Yp = _round_up(2 * M * O, LANE)

    def pad2(a, rows, cols):
        return jnp.pad(a, ((0, rows - a.shape[0]), (0, cols - a.shape[1])))

    w0p = pad2(jnp.transpose(params["w0"], (1, 0, 2)).reshape(F, M * H), Fp, MHp)  # lane-packed
    b0p = pad2(params["b0"].reshape(1, M * H), 1, MHp)
    w1p = pad2(block_diag(w1), MHp, MHp)
    b1p = pad2(b1.reshape(1, M * H), 1, MHp)
    whp = pad2(jnp.concatenate([block_diag(wloc), block_diag(wstd)], axis=1), MHp, Yp)
    bhp = pad2(jnp.concatenate([bloc.reshape(1, M * O), bstd.reshape(1, M * O)], axis=1), 1, Yp)

    return {
        "w0": w0p.astype(jnp.bfloat16), "b0": b0p.astype(jnp.float32),
        "w1": w1p.astype(jnp.bfloat16), "b1": b1p.astype(jnp.float32),
        "wh": whp.astype(jnp.bfloat16), "bh": bhp.astype(jnp.float32),
        "mo": M * O,
    }


def init_params(key, in_features, out_features, n_modalities, h_dim):
    """Deterministic synthetic per-modality parameters (matching the torch module layout:
    linear weights stored as [in_features, out_features], i.e. already transposed)."""
    keys = jax.random.split(key, 8)
    u = lambda k, shape, scale: jax.random.uniform(
        k, shape, jnp.float32, minval=-scale, maxval=scale
    )
    M = n_modalities
    # BatchNorm1d at init (eval mode): gamma=1, beta=0, running_mean=0, running_var=1
    bn_scale = jnp.full((M, h_dim), 1.0 / jnp.sqrt(1.0 + BN_EPS), jnp.float32)
    bn_shift = jnp.zeros((M, h_dim), jnp.float32)
    return {
        "w0": u(keys[0], (M, in_features, h_dim), 1.0 / in_features ** 0.5),
        "b0": u(keys[1], (M, h_dim), 1.0 / in_features ** 0.5),
        "bn0_scale": bn_scale, "bn0_shift": bn_shift,
        "w1": u(keys[2], (M, h_dim, h_dim), 1.0 / h_dim ** 0.5),
        "b1": u(keys[3], (M, h_dim), 1.0 / h_dim ** 0.5),
        "bn1_scale": bn_scale, "bn1_shift": bn_shift,
        "wloc": u(keys[4], (M, h_dim, out_features), 1.0 / h_dim ** 0.5),
        "bloc": u(keys[5], (M, out_features), 1.0 / h_dim ** 0.5),
        "wstd": u(keys[6], (M, h_dim, out_features), 1.0 / h_dim ** 0.5),
        "bstd": u(keys[7], (M, out_features), 1.0 / h_dim ** 0.5),
    }


def _reference_forward(xrep, params):
    """Pure-JAX f32 reference with identical (un-folded, per-modality) semantics."""
    locs, stds = [], []
    M = params["w0"].shape[0]
    for m in range(M):
        h = xrep
        for w, b, g, s in (
            (params["w0"][m], params["b0"][m], params["bn0_scale"][m], params["bn0_shift"][m]),
            (params["w1"][m], params["b1"][m], params["bn1_scale"][m], params["bn1_shift"][m]),
        ):
            h = h @ w + b
            h = jnp.where(h > 0, h, LEAKY_SLOPE * h)
            h = h * g + s
        locs.append(h @ params["wloc"][m] + params["bloc"][m])
        stds.append(_softplus(h @ params["wstd"][m] + params["bstd"][m]) + EPS)
    return jnp.concatenate(locs, axis=1), jnp.concatenate(stds, axis=1)


if __name__ == "__main__":
    # Small shapes consistent with the module's forward:
    #   x    : (B, in_raw_features)  -- unused on the xrep path (compute_l is lazy)
    #   xrep : (B, in_features)      -- the encoder input
    B, in_raw_features, in_features = 8, 64, 32
    out_features, n_modalities, h_dim = 16, 2, 32

    key = jax.random.PRNGKey(0)
    kx, kxrep, kparam = jax.random.split(key, 3)
    x = jax.random.normal(kx, (B, in_raw_features), jnp.float32)
    xrep = jax.random.normal(kxrep, (B, in_features), jnp.float32)

    params = init_params(kparam, in_features, out_features, n_modalities, h_dim)
    packed = pack_params(params)

    loc, std, l = composite_data_encoder_forward(x, xrep, packed)
    loc, std = jax.block_until_ready((loc, std))

    ref_loc, ref_std = _reference_forward(xrep, params)
    assert loc.shape == (B, n_modalities * out_features)
    assert std.shape == (B, n_modalities * out_features)
    assert l is None
    # bf16 matmul operands (f32 accumulation) vs f32 reference -> looser tolerance.
    assert jnp.allclose(loc, ref_loc, atol=5e-2, rtol=5e-2)
    assert jnp.allclose(std, ref_std, atol=5e-2, rtol=5e-2)
    assert bool(jnp.all(std > 0))

    print("KERNEL_OK")
</pallas_src>

<mosaic_0001>
module attributes {stable_mosaic.version = 11 : i64} {
  func.func @_composite_encoder_kernel(%arg0: i32, %arg1: memref<8x128xf32, #tpu.memory_space<vmem>>, %arg2: memref<128x128xbf16, #tpu.memory_space<vmem>>, %arg3: memref<1x128xf32, #tpu.memory_space<vmem>>, %arg4: memref<128x128xbf16, #tpu.memory_space<vmem>>, %arg5: memref<1x128xf32, #tpu.memory_space<vmem>>, %arg6: memref<128x128xbf16, #tpu.memory_space<vmem>>, %arg7: memref<1x128xf32, #tpu.memory_space<vmem>>, %arg8: memref<8x128xf32, #tpu.memory_space<vmem>>) attributes {dimension_semantics = [#tpu.dimension_semantics<parallel>], iteration_bounds = array<i64: 1>, scalar_prefetch = 0 : i64, scratch_operands = 0 : i64, tpu.core_type = #tpu.core_type<tc>, window_params = [{transform_indices = @transform_0, window_bounds = array<i64: 8, 128>}, {pipeline_mode = #tpu.pipeline_mode<synchronous>, transform_indices = @transform_1, window_bounds = array<i64: 128, 128>}, {pipeline_mode = #tpu.pipeline_mode<synchronous>, transform_indices = @transform_2, window_bounds = array<i64: 1, 128>}, {pipeline_mode = #tpu.pipeline_mode<synchronous>, transform_indices = @transform_3, window_bounds = array<i64: 128, 128>}, {pipeline_mode = #tpu.pipeline_mode<synchronous>, transform_indices = @transform_4, window_bounds = array<i64: 1, 128>}, {pipeline_mode = #tpu.pipeline_mode<synchronous>, transform_indices = @transform_5, window_bounds = array<i64: 128, 128>}, {pipeline_mode = #tpu.pipeline_mode<synchronous>, transform_indices = @transform_6, window_bounds = array<i64: 1, 128>}, {transform_indices = @transform_7, window_bounds = array<i64: 8, 128>}]} {
    %c0 = arith.constant 0 : index
    %c0_0 = arith.constant 0 : index
    %0 = vector.load %arg1[%c0, %c0_0] : memref<8x128xf32, #tpu.memory_space<vmem>>, vector<8x128xf32>
    %1 = arith.truncf %0 : vector<8x128xf32> to vector<8x128xbf16>
    %c0_1 = arith.constant 0 : index
    %c0_2 = arith.constant 0 : index
    %2 = vector.load %arg2[%c0_1, %c0_2] : memref<128x128xbf16, #tpu.memory_space<vmem>>, vector<128x128xbf16>
    %cst = arith.constant dense<0.000000e+00> : vector<8x128xf32>
    %3 = tpu.matmul %1, %2, %cst {dimension_numbers = #tpu.dot_dimension_numbers<[1], [0], [0], [1], [0, 0, 1, 1], [], []>} : vector<8x128xbf16>, vector<128x128xbf16>, vector<8x128xf32> -> vector<8x128xf32>
    %c0_3 = arith.constant 0 : index
    %c0_4 = arith.constant 0 : index
    %4 = vector.load %arg3[%c0_3, %c0_4] : memref<1x128xf32, #tpu.memory_space<vmem>>, vector<1x128xf32>
    %5 = vector.broadcast %4 : vector<1x128xf32> to vector<8x128xf32>
    %6 = arith.addf %3, %5 : vector<8x128xf32>
    %cst_5 = arith.constant 0.000000e+00 : f32
    %7 = vector.broadcast %cst_5 : f32 to vector<8x128xf32>
    %8 = arith.cmpf ogt, %6, %7 : vector<8x128xf32>
    %cst_6 = arith.constant 2.000000e-01 : f32
    %9 = vector.broadcast %cst_6 : f32 to vector<8x128xf32>
    %10 = arith.mulf %9, %6 : vector<8x128xf32>
    %11 = arith.select %8, %6, %10 : vector<8x128xi1>, vector<8x128xf32>
    %12 = arith.truncf %11 : vector<8x128xf32> to vector<8x128xbf16>
    %c0_7 = arith.constant 0 : index
    %c0_8 = arith.constant 0 : index
    %13 = vector.load %arg4[%c0_7, %c0_8] : memref<128x128xbf16, #tpu.memory_space<vmem>>, vector<128x128xbf16>
    %cst_9 = arith.constant dense<0.000000e+00> : vector<8x128xf32>
    %14 = tpu.matmul %12, %13, %cst_9 {dimension_numbers = #tpu.dot_dimension_numbers<[1], [0], [0], [1], [0, 0, 1, 1], [], []>} : vector<8x128xbf16>, vector<128x128xbf16>, vector<8x128xf32> -> vector<8x128xf32>
    %c0_10 = arith.constant 0 : index
    %c0_11 = arith.constant 0 : index
    %15 = vector.load %arg5[%c0_10, %c0_11] : memref<1x128xf32, #tpu.memory_space<vmem>>, vector<1x128xf32>
    %16 = vector.broadcast %15 : vector<1x128xf32> to vector<8x128xf32>
    %17 = arith.addf %14, %16 : vector<8x128xf32>
    %cst_12 = arith.constant 0.000000e+00 : f32
    %18 = vector.broadcast %cst_12 : f32 to vector<8x128xf32>
    %19 = arith.cmpf ogt, %17, %18 : vector<8x128xf32>
    %cst_13 = arith.constant 2.000000e-01 : f32
    %20 = vector.broadcast %cst_13 : f32 to vector<8x128xf32>
    %21 = arith.mulf %20, %17 : vector<8x128xf32>
    %22 = arith.select %19, %17, %21 : vector<8x128xi1>, vector<8x128xf32>
    %23 = arith.truncf %22 : vector<8x128xf32> to vector<8x128xbf16>
    %c0_14 = arith.constant 0 : index
    %c0_15 = arith.constant 0 : index
    %24 = vector.load %arg6[%c0_14, %c0_15] : memref<128x128xbf16, #tpu.memory_space<vmem>>, vector<128x128xbf16>
    %cst_16 = arith.constant dense<0.000000e+00> : vector<8x128xf32>
    %25 = tpu.matmul %23, %24, %cst_16 {dimension_numbers = #tpu.dot_dimension_numbers<[1], [0], [0], [1], [0, 0, 1, 1], [], []>} : vector<8x128xbf16>, vector<128x128xbf16>, vector<8x128xf32> -> vector<8x128xf32>
    %c0_17 = arith.constant 0 : index
    %c0_18 = arith.constant 0 : index
    %26 = vector.load %arg7[%c0_17, %c0_18] : memref<1x128xf32, #tpu.memory_space<vmem>>, vector<1x128xf32>
    %27 = vector.broadcast %26 : vector<1x128xf32> to vector<8x128xf32>
    %28 = arith.addf %25, %27 : vector<8x128xf32>
    %29 = tpu.iota {dimensions = array<i32: 1>} : vector<8x128xi32>
    %c32_i32 = arith.constant 32 : i32
    %30 = vector.broadcast %c32_i32 : i32 to vector<8x128xi32>
    %31 = arith.cmpi sge, %29, %30 : vector<8x128xi32>
    %c64_i32 = arith.constant 64 : i32
    %32 = vector.broadcast %c64_i32 : i32 to vector<8x128xi32>
    %33 = arith.cmpi slt, %29, %32 : vector<8x128xi32>
    %34 = arith.andi %31, %33 : vector<8x128xi1>
    %cst_19 = arith.constant 2.000000e+01 : f32
    %35 = vector.broadcast %cst_19 : f32 to vector<8x128xf32>
    %36 = arith.cmpf ogt, %28, %35 : vector<8x128xf32>
    %cst_20 = arith.constant 2.000000e+01 : f32
    %37 = vector.broadcast %cst_20 : f32 to vector<8x128xf32>
    %38 = arith.minimumf %28, %37 : vector<8x128xf32>
    %39 = math.exp %38 : vector<8x128xf32>
    %40 = math.log1p %39 : vector<8x128xf32>
    %41 = arith.select %36, %28, %40 : vector<8x128xi1>, vector<8x128xf32>
    %cst_21 = arith.constant 1.000000e-07 : f32
    %42 = vector.broadcast %cst_21 : f32 to vector<8x128xf32>
    %43 = arith.addf %41, %42 : vector<8x128xf32>
    %44 = arith.select %34, %43, %28 : vector<8x128xi1>, vector<8x128xf32>
    %c0_22 = arith.constant 0 : index
    %c0_23 = arith.constant 0 : index
    %45 = vector.load %arg8[%c0_22, %c0_23] : memref<8x128xf32, #tpu.memory_space<vmem>>, vector<8x128xf32>
    tpu.vector_store %arg8[%c0_22, %c0_23], %44 {strides = array<i32>} : memref<8x128xf32, #tpu.memory_space<vmem>>, vector<8x128xf32>,
    return
  }
  func.func @transform_0(%arg0: i32) -> (i32, i32) {
    %c0_i32 = arith.constant 0 : i32
    %c0_i32_0 = arith.constant 0 : i32
    return %arg0, %c0_i32 : i32, i32
  }
  func.func @transform_1(%arg0: i32) -> (i32, i32) {
    %c0_i32 = arith.constant 0 : i32
    %c0_i32_0 = arith.constant 0 : i32
    %c0_i32_1 = arith.constant 0 : i32
    return %c0_i32, %c0_i32_0 : i32, i32
  }
  func.func @transform_2(%arg0: i32) -> (i32, i32) {
    %c0_i32 = arith.constant 0 : i32
    %c0_i32_0 = arith.constant 0 : i32
    %c0_i32_1 = arith.constant 0 : i32
    return %c0_i32, %c0_i32_0 : i32, i32
  }
  func.func @transform_3(%arg0: i32) -> (i32, i32) {
    %c0_i32 = arith.constant 0 : i32
    %c0_i32_0 = arith.constant 0 : i32
    %c0_i32_1 = arith.constant 0 : i32
    return %c0_i32, %c0_i32_0 : i32, i32
  }
  func.func @transform_4(%arg0: i32) -> (i32, i32) {
    %c0_i32 = arith.constant 0 : i32
    %c0_i32_0 = arith.constant 0 : i32
    %c0_i32_1 = arith.constant 0 : i32
    return %c0_i32, %c0_i32_0 : i32, i32
  }
  func.func @transform_5(%arg0: i32) -> (i32, i32) {
    %c0_i32 = arith.constant 0 : i32
    %c0_i32_0 = arith.constant 0 : i32
    %c0_i32_1 = arith.constant 0 : i32
    return %c0_i32, %c0_i32_0 : i32, i32
  }
  func.func @transform_6(%arg0: i32) -> (i32, i32) {
    %c0_i32 = arith.constant 0 : i32
    %c0_i32_0 = arith.constant 0 : i32
    %c0_i32_1 = arith.constant 0 : i32
    return %c0_i32, %c0_i32_0 : i32, i32
  }
  func.func @transform_7(%arg0: i32) -> (i32, i32) {
    %c0_i32 = arith.constant 0 : i32
    %c0_i32_0 = arith.constant 0 : i32
    return %arg0, %c0_i32 : i32, i32
  }
}

</mosaic_0001>

<bundles_post_ra>
// kernel: tpu_custom_call.1
= control target key start
LH: loop header
LB: loop body
LE: loop exit
PB: predicated region body
PF: predicated region fallthrough
CT: control target
= control target key end

     0   :  { %12 = vsyncpa [#allocation3], 0  ;;  %s715_s0 = inlined_call_operand.hbm [shape: f32[8,128], index: 0, kind: input, shape index: {}]   ;;  %s716_s1 = inlined_call_operand.hbm [shape: bf16[128,128], index: 1, kind: input, shape index: {}]   ;;  %s717_s2 = inlined_call_operand.vmem [shape: f32[1,128], index: 2, kind: input, shape index: {}]   ;;  %s718_s3 = inlined_call_operand.hbm [shape: bf16[128,128], index: 3, kind: input, shape index: {}]   ;;  %s719_s4 = inlined_call_operand.vmem [shape: f32[1,128], index: 4, kind: input, shape index: {}]   ;;  %s720_s5 = inlined_call_operand.hbm [shape: bf16[128,128], index: 5, kind: input, shape index: {}]   ;;  %s721_s6 = inlined_call_operand.vmem [shape: f32[1,128], index: 6, kind: input, shape index: {}]   ;;  %s722_s7 = inlined_call_operand.hbm [shape: f32[8,128], index: 7, kind: output, shape index: {}]  }
   0x1   :  { %13 = vsyncpa [#allocation6], 0 }
   0x2   :  { %14 = vsyncpa [#allocation9], 0  ;;  %s31_s26 = sshll.u32 %s716_s1, 4  ;;  %s32_s26 = int_to_ptr.hbm [resolvable:$true] %s31_s26 }
   0x3   :  { %15 = vsyncpa [#allocation4], 0  ;;  %s644_s27 = smov [#allocation5]   ;;  %s21_s8 = sshll.u32 %s715_s0, 4  ;;  %s22_s8 = int_to_ptr.hbm [resolvable:$true] %s21_s8 }
   0x4   :  { %s33_s28 = sshll.u32 %s644_s27, 4  ;;  %s645_s9 = smov 64   ;;  %s34_s28 = int_to_ptr.vmem [resolvable:$true] %s33_s28 }
   0x5   :  { %s646_s10 = smov 4   ;;  %s647_s11 = smov [#allocation2]  }
   0x6   :  { %39 = dma.hbm_to_vmem [thread:$0]  %s32_s26, 1024, %s34_s28, [#allocation6], %s645_s9, %s645_s9, %s646_s10  }
   0x7   :  { %s23_s12 = sshll.u32 %s647_s11, 4  ;;  %s46_s15 = sshll.u32 %s718_s3, 4  ;;  %s24_s12 = int_to_ptr.vmem [resolvable:$true] %s23_s12  ;;  %s47_s15 = int_to_ptr.hbm [resolvable:$true] %s46_s15 }
   0x8   :  { %26 = dma.hbm_to_vmem [thread:$0]  %s22_s8, 128, %s24_s12, [#allocation3]  }
   0x9   :  { %s61_s17 = sshll.u32 %s720_s5, 4  ;;  %s648_s18 = smov [#allocation7]   ;;  %s62_s17 = int_to_ptr.hbm [resolvable:$true] %s61_s17 }
   0xa   :  { %s48_s19 = sshll.u32 %s648_s18, 4  ;;  %s649_s0 = smov [#allocation8]   ;;  %s49_s19 = int_to_ptr.vmem [resolvable:$true] %s48_s19 }
   0xb   :  { %54 = dma.hbm_to_vmem [thread:$0]  %s47_s15, 1024, %s49_s19, [#allocation6], %s645_s9, %s645_s9, %s646_s10  }
   0xc   :  { %s63_s20 = sshll.u32 %s649_s0, 4  ;;  %s64_s20 = int_to_ptr.vmem [resolvable:$true] %s63_s20 }
   0xd   :  { %69 = dma.hbm_to_vmem [thread:$0]  %s62_s17, 1024, %s64_s20, [#allocation9], %s645_s9, %s645_s9, %s646_s10  }
   0xe   :  { %636 = dma.done.wait [#allocation3], 128  }
   0xf   :  { %637 = vsyncadd [#allocation3], 4294967168 }
  0x10   :  { %638 = dma.done.wait [#allocation6], 2048  }
  0x11   :  { %639 = vsyncadd [#allocation6], 4294965248 }
  0x12   :  { %640 = dma.done.wait [#allocation9], 1024  }
  0x13   :  { %641 = vsyncadd [#allocation9], 4294966272  ;;  %v485_v0 = vld [vmem:[#allocation5 + $0x38] sm:$0xff]  ;;  %v484_v1 = vld [vmem:[#allocation5 + $0x30] sm:$0xff]  ;;  %v341_v49 = vlaneseq  ;;  %s370_s26 = sshll.u32 %s722_s7, 4  ;;  %s371_s26 = int_to_ptr.hbm [resolvable:$true] %s370_s26 }
  0x14   :  { %158 = vmatpush.bf16.msra.mxu0 %v485_v0  ;;  %v493_v2 = vld [vmem:[#allocation7 + $0x38] sm:$0xff]  ;;  %v492_v3 = vld [vmem:[#allocation7 + $0x30] sm:$0xff]  ;;  %v483_v4 = vld [vmem:[#allocation5 + $0x28] sm:$0xff] }
  0x15   :  { %243 = vmatpush.bf16.msra.mxu1 %v493_v2  ;;  %v491_v5 = vld [vmem:[#allocation7 + $0x28] sm:$0xff]  ;;  %v482_v6 = vld [vmem:[#allocation5 + $0x20] sm:$0xff]  ;;  %v481_v8 = vld [vmem:[#allocation5 + $0x18] sm:$0xff]  ;;  %v342_v51 = vand.u32 127, %v341_v49 }
  0x16   :  { %v490_v7 = vld [vmem:[#allocation7 + $0x20] sm:$0xff]  ;;  %v489_v9 = vld [vmem:[#allocation7 + $0x18] sm:$0xff]  ;;  %v480_v10 = vld [vmem:[#allocation5 + $0x10] sm:$0xff] }
  0x17   :  { %v488_v11 = vld [vmem:[#allocation7 + $0x10] sm:$0xff]  ;;  %v479_v12 = vld [vmem:[#allocation5 + $0x8] sm:$0xff]  ;;  %v478_v13 = vld [vmem:[#allocation5] sm:$0xff]  ;;  %vm343_vm2 = vcmp.ge.s32.totalorder %v342_v51, 32  ;;  %vm344_vm3 = vcmp.lt.s32.totalorder %v342_v51, 64 }
  0x18   :  { %159 = vmatpush.bf16.msra.mxu0 %v484_v1  ;;  %v88_v14 = vld [vmem:[#allocation2] sm:$0xff]  ;;  %v487_v16 = vld [vmem:[#allocation7 + $0x8] sm:$0xff]  ;;  %v486_v17 = vld [vmem:[#allocation7] sm:$0xff] }
  0x19   :  { %244 = vmatpush.bf16.msra.mxu1 %v492_v3  ;;  %v89_v15 = vpack.c.bf16 %v88_v14, %v88_v14  ;;  %v501_v18 = vld [vmem:[#allocation8 + $0x38] sm:$0xff]  ;;  %v500_v19 = vld [vmem:[#allocation8 + $0x30] sm:$0xff]  ;;  %v499_v20 = vld [vmem:[#allocation8 + $0x28] sm:$0xff] }
  0x1a   :  { %328 = vmatpush.bf16.msra.mxu2 %v501_v18  ;;  %v498_v21 = vld [vmem:[#allocation8 + $0x20] sm:$0xff]  ;;  %v497_v22 = vld [vmem:[#allocation8 + $0x18] sm:$0xff]  ;;  %v496_v23 = vld [vmem:[#allocation8 + $0x10] sm:$0xff] }
  0x1b   :  { %v509_v24 = vld [vmem:[%s717_s2] ss:$0 sm:$0xff]  ;;  %v495_v31 = vld [vmem:[#allocation8 + $0x8] sm:$0xff]  ;;  %v494_v32 = vld [vmem:[#allocation8] sm:$0xff] }
  0x1c   :  { %160 = vmatpush.bf16.msra.mxu0 %v483_v4  ;;  %v510_v33 = vld [vmem:[%s719_s4] ss:$0 sm:$0xff]  ;;  %s650_s4 = smov [#allocation10]   ;;  %vm345_vm6 = vmand %vm343_vm2, %vm344_vm3 }
  0x1d   :  { %245 = vmatpush.bf16.msra.mxu1 %v491_v5  ;;  %v511_v40 = vld [vmem:[%s721_s6] ss:$0 sm:$0xff]  ;;  %s368_s6 = sshll.u32 %s650_s4, 4  ;;  %s369_s6 = int_to_ptr.vmem [resolvable:$true] %s368_s6 }
  0x1e   :  { %329 = vmatpush.bf16.msra.mxu2 %v500_v19 }
  0x20   :  { %161 = vmatpush.bf16.msra.mxu0 %v482_v6 }
  0x21   :  { %246 = vmatpush.bf16.msra.mxu1 %v490_v7 }
  0x22   :  { %330 = vmatpush.bf16.msra.mxu2 %v499_v20 }
  0x24   :  { %162 = vmatpush.bf16.msra.mxu0 %v481_v8 }
  0x25   :  { %247 = vmatpush.bf16.msra.mxu1 %v489_v9 }
  0x26   :  { %331 = vmatpush.bf16.msra.mxu2 %v498_v21 }
  0x28   :  { %163 = vmatpush.bf16.msra.mxu0 %v480_v10 }
  0x29   :  { %248 = vmatpush.bf16.msra.mxu1 %v488_v11 }
  0x2a   :  { %332 = vmatpush.bf16.msra.mxu2 %v497_v22 }
  0x2c   :  { %164 = vmatpush.bf16.msra.mxu0 %v479_v12 }
  0x2d   :  { %249 = vmatpush.bf16.msra.mxu1 %v487_v16 }
  0x2e   :  { %333 = vmatpush.bf16.msra.mxu2 %v496_v23 }
  0x30   :  { %165 = vmatpush.bf16.msra.mxu0 %v478_v13 }
  0x31   :  { %250 = vmatpush.bf16.msra.mxu1 %v486_v17 }
  0x32   :  { %334 = vmatpush.bf16.msra.mxu2 %v495_v31 }
  0x33   :  { %166 = vmatmul.bf16.vlgmr.msra.gmra.mxu0 %v89_v15 }
  0x36   :  { %335 = vmatpush.bf16.msra.mxu2 %v494_v32 }
  0xb0   :  { %v167_v25 = vpop.f32.mrf.mxu0 }
  0xb1   :  { %v168_v26 = vadd.f32 %v509_v24, %v167_v25 }
  0xb3   :  { %v172_v27 = vmul.f32 0.2, %v168_v26  ;;  %vm171_vm0 = vcmp.gt.f32.partialorder %v168_v26, 0.0 }
  0xb5   :  { %v173_v28 = vsel %vm171_vm0, %v168_v26, %v172_v27 }
  0xb6   :  { %v174_v29 = vpack.c.bf16 %v173_v28, %v173_v28 }
  0xb8   :  { %v169_v30 = vpop.f32.mrf.mxu0  ;;  %251 = vmatmul.bf16.vlgmr.msra.gmra.mxu1 %v174_v29 }
 0x135   :  { %v252_v34 = vpop.f32.mrf.mxu1 }
 0x136   :  { %v253_v35 = vadd.f32 %v510_v33, %v252_v34 }
 0x138   :  { %v257_v36 = vmul.f32 0.2, %v253_v35  ;;  %vm256_vm1 = vcmp.gt.f32.partialorder %v253_v35, 0.0 }
 0x13a   :  { %v258_v37 = vsel %vm256_vm1, %v253_v35, %v257_v36 }
 0x13b   :  { %v259_v38 = vpack.c.bf16 %v258_v37, %v258_v37 }
 0x13d   :  { %v254_v39 = vpop.f32.mrf.mxu1  ;;  %336 = vmatmul.bf16.vlgmr.msra.gmra.mxu2 %v259_v38 }
 0x1c0   :  { %v337_v41 = vpop.f32.mrf.mxu2 }
 0x1c1   :  { %v338_v42 = vadd.f32 %v511_v40, %v337_v41 }
 0x1c3   :  { %v347_v43 = vmin.f32 %v338_v42, 20.0  ;;  %vm346_vm5 = vcmp.gt.f32.partialorder %v338_v42, 20.0 }
 0x1c5   :  { %v348_v44 = vmul.f32 1.442695, %v347_v43 }
 0x1c7   :  { %512 = vpow2.f32 %v348_v44 }
 0x1c8   :  { %v339_v45 = vpop.f32.mrf.mxu2 }
 0x1cd   :  { %v513_v46 = vpop.eup %512 }
 0x1ce   :  { %v350_v47 = vadd.f32 1.0, %v513_v46  ;;  %v353_v48 = vmul.f32 -0.5, %v513_v46  ;;  %v356_v52 = vand.u32 2147483647, %v513_v46 }
 0x1d0   :  { %514 = vlog2.f32 %v350_v47  ;;  %v354_v50 = vadd.f32 1.0, %v353_v48  ;;  %vm357_vm4 = vcmp.lt.f32.partialorder %v356_v52, 0.0004427343 }
 0x1d2   :  { %v355_v55 = vmul.f32 %v513_v46, %v354_v50 }
 0x1d6   :  { %v515_v53 = vpop.eup %514 }
 0x1d7   :  { %v352_v54 = vmul.f32 0.6931472, %v515_v53 }
 0x1d9   :  { %v358_v56 = vsel %vm357_vm4, %v355_v55, %v352_v54 }
 0x1da   :  { %v359_v57 = vsel %vm346_vm5, %v338_v42, %v358_v56 }
 0x1db   :  { %v360_v58 = vadd.f32 1e-07, %v359_v57 }
 0x1dd   :  { %v361_v59 = vsel %vm345_vm6, %v360_v58, %v338_v42 }
 0x1de   :  { %362 = vst [vmem:[#allocation10] sm:$0xff] %v361_v59 }
 0x1df   :  { %373 = dma.vmem_to_hbm [thread:$0]  %s369_s6, 128, %s371_s26, [#allocation4]  }
 0x1e0   :  { %642 = dma.done.wait [#allocation4], 128  }
 0x1e1   :  { %643 = vsyncadd [#allocation4], 4294967168 }
 0x1e2   :  { %378 = vsyncpa [#allocation3], 1 }
 0x1e3   :  { %379 = vsyncpa [#allocation6], 1 }
 0x1e4   :  { %380 = vsyncpa [#allocation9], 1 }
 0x1e5   :  { %381 = vsyncpa [#allocation4], 1 }

</bundles_post_ra>
